<compile_context>
chip_gen: v7x
topology: tpu7x:2x2x1
jax: 0.10.0
libtpu: 0.0.40
codegen_flags: <defaults>
</compile_context>

<pallas_src>
import functools

import jax
import jax.numpy as jnp
from jax.experimental import pallas as pl
from jax.experimental.pallas import tpu as pltpu

_MiB = 1024 * 1024


# ---------------------------------------------------------------------------
# helpers
# ---------------------------------------------------------------------------
def _round_up(x, m):
    return ((x + m - 1) // m) * m


def _pad_to(a, shape):
    return jnp.pad(a, [(0, s - d) for s, d in zip(shape, a.shape)])


def _vmem_limit_bytes():
    """Per-generation scoped-VMEM limit: ~3/4 of physical, capped at 100 MiB."""
    try:
        cap = pltpu.get_tpu_info().vmem_capacity_bytes   # 128 MiB v5e/v6e, 64 MiB v7x
    except Exception:
        cap = 64 * _MiB                                  # conservative fallback
    return int(min(cap * 3 // 4, 100 * _MiB))


def _pick_tiles(M, K, N, in_bytes, out_bytes, budget_bytes):
    """Largest (tm, tk, tn) tiles whose double-buffered working set fits budget."""
    tms = [c for c in (512, 256, 128, 64, 32, 16, 8) if M % c == 0] or [M]
    tns = [c for c in (1024, 512, 256, 128) if N % c == 0] or [N]
    tks = [c for c in (1024, 512, 256, 128) if K % c == 0] or [K]
    best, best_key = (tms[-1], tks[-1], tns[-1]), (-1, -1)
    for tm in tms:
        for tn in tns:
            for tk in tks:
                ws = ((2 * tm * tk + 2 * tk * tn) * in_bytes      # double-buffered inputs
                      + 2 * tm * tn * out_bytes                   # double-buffered output
                      + tm * tn * 4 + 2 * tn * 4)                 # f32 acc + bias
                key = (tm * tn, tk)
                if ws <= budget_bytes and key > best_key:
                    best, best_key = (tm, tk, tn), key
    return best


def _pick_ts(seq, b_blk, H, stream_bytes, budget_bytes, max_ts=64):
    """Largest divisor of seq whose recurrence resident set fits the VMEM budget."""
    # Resident set: 2x xg blocks + 2x h_out blocks + W_hh (assume 2 bufs) + f32 state.
    fixed = 2 * H * 4 * H * stream_bytes + 8 * b_blk * H * 4
    per_ts = 2 * b_blk * 4 * H * stream_bytes + 2 * b_blk * H * stream_bytes
    cap = max(1, min(max_ts, (budget_bytes - fixed) // max(per_ts, 1)))
    for ts in range(min(seq, int(cap)), 0, -1):
        if seq % ts == 0:
            return ts
    # TODO(synk): handle seq with no small divisor via a scalar-prefetched
    # per-block valid-step count instead of degrading to TS=1.
    return 1


# ---------------------------------------------------------------------------
# Tiled matmul + bias:  out = x @ w + b        (M,K) @ (K,N) + (1,N)
# ---------------------------------------------------------------------------
def _matmul_bias_acc_kernel(x_ref, w_ref, b_ref, o_ref, acc_ref):
    # Narrow (e.g. bf16) output: accumulate in an f32 scratch, cast once.
    k = pl.program_id(2)

    @pl.when(k == 0)
    def _():
        acc_ref[...] = jnp.zeros_like(acc_ref)

    acc_ref[...] += jnp.dot(x_ref[...], w_ref[...],
                            preferred_element_type=jnp.float32)

    @pl.when(k == pl.num_programs(2) - 1)
    def _():
        o_ref[...] = (acc_ref[...] + b_ref[...]).astype(o_ref.dtype)


def _matmul_bias_f32_kernel(x_ref, w_ref, b_ref, o_ref):
    # f32 output: accumulate straight into the resident output block (no scratch).
    k = pl.program_id(2)

    @pl.when(k == 0)
    def _():
        o_ref[...] = jnp.broadcast_to(b_ref[...], o_ref.shape)

    o_ref[...] += jnp.dot(x_ref[...], w_ref[...],
                          preferred_element_type=jnp.float32)


def _matmul_bias(x, w, b, out_dtype, vmem_limit):
    M, K = x.shape
    _, N = w.shape
    in_bytes = jnp.dtype(x.dtype).itemsize
    out_bytes = jnp.dtype(out_dtype).itemsize
    tm, tk, tn = _pick_tiles(M, K, N, in_bytes, out_bytes,
                             budget_bytes=int(vmem_limit * 0.6))
    if jnp.dtype(out_dtype) == jnp.dtype(jnp.float32):
        kernel, scratch = _matmul_bias_f32_kernel, []
    else:
        kernel, scratch = _matmul_bias_acc_kernel, [pltpu.VMEM((tm, tn), jnp.float32)]
    return pl.pallas_call(
        kernel,
        out_shape=jax.ShapeDtypeStruct((M, N), out_dtype),
        grid_spec=pltpu.PrefetchScalarGridSpec(
            num_scalar_prefetch=0,
            grid=(M // tm, N // tn, K // tk),
            in_specs=[
                pl.BlockSpec((tm, tk), lambda i, j, k: (i, k)),
                pl.BlockSpec((tk, tn), lambda i, j, k: (k, j)),
                pl.BlockSpec((1, tn), lambda i, j, k: (0, j)),
            ],
            out_specs=pl.BlockSpec((tm, tn), lambda i, j, k: (i, j)),
            scratch_shapes=scratch,
        ),
        compiler_params=pltpu.CompilerParams(
            dimension_semantics=("parallel", "parallel", "arbitrary"),
            vmem_limit_bytes=vmem_limit),
    )(x, w, b[None, :])


# ---------------------------------------------------------------------------
# Recurrent LSTM cell loop.  One grid step == TS time steps for one batch block.
# Gate inputs (x @ W_ih^T + b) are precomputed; only h @ W_hh^T runs per step.
# hT_ref / cT_ref (index_map constant in time) carry the state across blocks.
# ---------------------------------------------------------------------------
def _lstm_recurrent_kernel(nhid_p, ts, unroll,
                           xg_ref, whh_ref, h0_ref, c0_ref,
                           h_out_ref, hT_ref, cT_ref):
    H = nhid_p
    t_blk = pl.program_id(1)

    # First time block of each batch block: seed the resident state.
    @pl.when(t_blk == 0)
    def _():
        hT_ref[...] = h0_ref[...]
        cT_ref[...] = c0_ref[...]

    # Read state ONCE per block; carry (h, c) through the loop instead of
    # re-loading / re-storing the state refs every time step.
    carry0 = (hT_ref[...], cT_ref[...])

    def step(i, carry):
        h_prev, c_prev = carry                              # (B, H) f32
        gates = xg_ref[i] + jnp.dot(                        # (B, 4H) f32 accumulation
            h_prev.astype(whh_ref.dtype), whh_ref[...],
            preferred_element_type=jnp.float32)
        # Gates re-packed to (input, forget, output, cell) at weight-prep time:
        # one sigmoid over the contiguous 3H slice, one tanh over the last H.
        # Slices are 128-lane aligned because H is padded to a multiple of 128.
        # TODO(synk): chunk the 4H gate dim of W_hh here for very large H (v7x).
        sig = jax.nn.sigmoid(gates[:, 0:3 * H])
        i_g = sig[:, 0 * H:1 * H]
        f_g = sig[:, 1 * H:2 * H]
        o_g = sig[:, 2 * H:3 * H]
        g_g = jnp.tanh(gates[:, 3 * H:4 * H])
        c_new = f_g * c_prev + i_g * g_g
        h_new = o_g * jnp.tanh(c_new)
        h_out_ref[i] = h_new.astype(h_out_ref.dtype)
        return (h_new, c_new)

    h_last, c_last = jax.lax.fori_loop(0, ts, step, carry0, unroll=unroll)
    hT_ref[...] = h_last
    cT_ref[...] = c_last


def _run_recurrence(xg, whh_t, h0_p, c0_p, seq, ts, b_blk, H, stream_dtype,
                    vmem_limit, unroll, single_buffer_whh):
    B = h0_p.shape[0]
    nb, nt = B // b_blk, seq // ts

    stream3 = lambda b, t: (t, b, 0)
    state2 = lambda b, t: (b, 0)
    if single_buffer_whh:
        # W_hh is grid-invariant: one VMEM buffer is enough (halves its cost).
        whh_spec = pl.BlockSpec((H, 4 * H), lambda b, t: (0, 0),
                                pipeline_mode=pl.Buffered(1))
    else:
        whh_spec = pl.BlockSpec((H, 4 * H), lambda b, t: (0, 0))

    return pl.pallas_call(
        functools.partial(_lstm_recurrent_kernel, H, ts,
                          max(1, min(int(unroll), ts))),
        out_shape=(
            jax.ShapeDtypeStruct((seq, B, H), stream_dtype),   # h_t, all steps
            jax.ShapeDtypeStruct((B, H), jnp.float32),         # h_T
            jax.ShapeDtypeStruct((B, H), jnp.float32),         # c_T
        ),
        grid_spec=pltpu.PrefetchScalarGridSpec(
            num_scalar_prefetch=0,
            grid=(nb, nt),
            in_specs=[
                pl.BlockSpec((ts, b_blk, 4 * H), stream3),     # precomputed gates
                whh_spec,                                      # W_hh^T (invariant)
                pl.BlockSpec((b_blk, H), state2),              # h0
                pl.BlockSpec((b_blk, H), state2),              # c0
            ],
            out_specs=[
                pl.BlockSpec((ts, b_blk, H), stream3),         # h outputs
                pl.BlockSpec((b_blk, H), state2),              # h_T (resident)
                pl.BlockSpec((b_blk, H), state2),              # c_T (resident)
            ],
        ),
        compiler_params=pltpu.CompilerParams(
            # batch blocks independent -> parallel (v7x megacore split);
            # time axis is the serial recurrence -> arbitrary (innermost).
            dimension_semantics=("parallel", "arbitrary"),
            vmem_limit_bytes=vmem_limit),
    )(xg, whh_t, h0_p, c0_p)


# ---------------------------------------------------------------------------
# Wrapper: full OurModel forward.
# ---------------------------------------------------------------------------
def our_model_forward(x, hidden, params, mxu_dtype=jnp.bfloat16, unroll=4):
    """Forward pass of OurModel.

    x      : (seq, batch, ntoken)   (time-major, like torch.nn.LSTM default)
    hidden : (h0, c0), each (1, batch, nhid)
    params : dict with PyTorch-shaped weights
    mxu_dtype : MXU operand / streaming dtype (default bf16; f32 accumulation
                and f32 h/c state are kept either way).
    Returns (decoded (seq, batch, ntoken), (hT, cT)).
    """
    seq, batch, ntoken = x.shape
    h0, c0 = hidden
    nhid = h0.shape[-1]

    # Batch padding: sublane-align to 8.  For batch > 8, pad to a multiple of 16
    # so the recurrence gets 2 "parallel" batch blocks (one per v7x TensorCore).
    if batch > 8:
        B = _round_up(batch, 16)
        b_blk = B // 2
    else:
        B = _round_up(batch, 8)
        b_blk = B
    H = _round_up(nhid, 128)      # lane alignment (gate slices on 128-lane bounds)
    V = _round_up(ntoken, 128)    # lane alignment (lane-dense decoder output)

    vmem_limit = _vmem_limit_bytes()
    stream_bytes = jnp.dtype(mxu_dtype).itemsize

    # ---- weight prep: re-pack gates (i,f,g,o)->(i,f,o,g), gate-major padding,
    #      pre-transpose for (rows,in)@(in,out) layouts -------------------------
    gate_perm = jnp.array([0, 1, 3, 2])
    w_ih = params["w_ih"].reshape(4, nhid, ntoken)[gate_perm]
    w_ih_t = _pad_to(w_ih, (4, H, V)).reshape(4 * H, V).T.astype(mxu_dtype)   # (V, 4H)
    w_hh = params["w_hh"].reshape(4, nhid, nhid)[gate_perm]
    w_hh_t = _pad_to(w_hh, (4, H, H)).reshape(4 * H, H).T.astype(mxu_dtype)   # (H, 4H)
    b_comb = (params["b_ih"] + params["b_hh"]).reshape(4, nhid)[gate_perm]
    b_comb = _pad_to(b_comb, (4, H)).reshape(4 * H).astype(jnp.float32)       # (4H,)
    w_dec_t = _pad_to(params["w_dec"], (V, H)).T.astype(mxu_dtype)            # (H, V)
    b_dec = _pad_to(params["b_dec"], (V,)).astype(jnp.float32)                # (V,)

    x_p = _pad_to(x, (seq, B, V)).astype(mxu_dtype)
    h0_p = _pad_to(h0[0], (B, H)).astype(jnp.float32)
    c0_p = _pad_to(c0[0], (B, H)).astype(jnp.float32)

    # ---- 1. input projection for ALL time steps: one big MXU matmul ----------
    # Streamed in mxu_dtype (bf16 by default) to halve the xg HBM round-trip.
    xg = _matmul_bias(x_p.reshape(seq * B, V), w_ih_t, b_comb, mxu_dtype, vmem_limit)
    xg = xg.reshape(seq, B, 4 * H)

    # ---- 2. recurrence: TS time steps per grid step (VMEM-budgeted TS) -------
    ts = _pick_ts(seq, b_blk, H, stream_bytes, int(vmem_limit * 0.7))
    try:
        h_all, hT, cT = _run_recurrence(xg, w_hh_t, h0_p, c0_p, seq, ts, b_blk,
                                        H, mxu_dtype, vmem_limit, unroll,
                                        single_buffer_whh=True)
    except Exception:
        # pl.Buffered(1) not supported by this jax/libtpu combo -> default bufs.
        h_all, hT, cT = _run_recurrence(xg, w_hh_t, h0_p, c0_p, seq, ts, b_blk,
                                        H, mxu_dtype, vmem_limit, unroll,
                                        single_buffer_whh=False)

    # ---- 3. decoder over all (seq*batch) rows: one big MXU matmul ------------
    decoded = _matmul_bias(h_all.reshape(seq * B, H), w_dec_t, b_dec,
                           jnp.float32, vmem_limit)
    decoded = decoded.reshape(seq, B, V)[:, :batch, :ntoken].astype(x.dtype)

    hT = hT[:batch, :nhid][None].astype(x.dtype)
    cT = cT[:batch, :nhid][None].astype(x.dtype)
    return decoded, (hT, cT)


# ---------------------------------------------------------------------------
# Pure-JAX reference (mirrors torch.nn.LSTM + nn.Linear semantics).
# ---------------------------------------------------------------------------
def _reference_forward(x, hidden, params):
    w_ih, w_hh = params["w_ih"], params["w_hh"]
    b = params["b_ih"] + params["b_hh"]
    w_dec, b_dec = params["w_dec"], params["b_dec"]
    nhid = w_hh.shape[1]

    def step(carry, x_t):
        h, c = carry
        gates = x_t @ w_ih.T + h @ w_hh.T + b
        i = jax.nn.sigmoid(gates[:, 0 * nhid:1 * nhid])
        f = jax.nn.sigmoid(gates[:, 1 * nhid:2 * nhid])
        g = jnp.tanh(gates[:, 2 * nhid:3 * nhid])
        o = jax.nn.sigmoid(gates[:, 3 * nhid:4 * nhid])
        c_new = f * c + i * g
        h_new = o * jnp.tanh(c_new)
        return (h_new, c_new), h_new

    h0, c0 = hidden
    (hT, cT), outs = jax.lax.scan(step, (h0[0], c0[0]), x)
    decoded = outs @ w_dec.T + b_dec
    return decoded, (hT[None], cT[None])


def init_params(key, ntoken, nhid):
    """LSTM ~ U(-1/sqrt(nhid), 1/sqrt(nhid)); decoder as in init_weights()."""
    k1, k2, k3, k4, k5 = jax.random.split(key, 5)
    bound = 1.0 / jnp.sqrt(nhid)
    return {
        "w_ih": jax.random.uniform(k1, (4 * nhid, ntoken), jnp.float32, -bound, bound),
        "w_hh": jax.random.uniform(k2, (4 * nhid, nhid), jnp.float32, -bound, bound),
        "b_ih": jax.random.uniform(k3, (4 * nhid,), jnp.float32, -bound, bound),
        "b_hh": jax.random.uniform(k4, (4 * nhid,), jnp.float32, -bound, bound),
        "w_dec": jax.random.uniform(k5, (ntoken, nhid), jnp.float32, -0.1, 0.1),
        "b_dec": jnp.zeros((ntoken,), jnp.float32),
    }


if __name__ == "__main__":
    ntoken, nhid = 16, 32
    seq, batch = 8, 4

    key = jax.random.PRNGKey(0)
    k_x, k_p = jax.random.split(key)
    params = init_params(k_p, ntoken, nhid)

    x = jax.random.normal(k_x, (seq, batch, ntoken), jnp.float32)
    h0 = jnp.zeros((1, batch, nhid), jnp.float32)   # init_hidden(bsz)
    c0 = jnp.zeros((1, batch, nhid), jnp.float32)

    dec_exp, (hT_exp, cT_exp) = _reference_forward(x, (h0, c0), params)

    # Fast (default) path: bf16 MXU operands, bf16 xg/h_all, f32 accumulation.
    decoded, (hT, cT) = our_model_forward(x, (h0, c0), params)
    jax.block_until_ready((decoded, hT, cT))
    assert decoded.shape == (seq, batch, ntoken)
    assert hT.shape == (1, batch, nhid) and cT.shape == (1, batch, nhid)
    assert jnp.allclose(decoded, dec_exp, atol=3e-2, rtol=3e-2)
    assert jnp.allclose(hT, hT_exp, atol=3e-2, rtol=3e-2)
    assert jnp.allclose(cT, cT_exp, atol=3e-2, rtol=3e-2)

    # Exact path (f32 MXU operands) validates kernel structure at tight tolerance.
    dec32, (hT32, cT32) = our_model_forward(x, (h0, c0), params,
                                            mxu_dtype=jnp.float32)
    jax.block_until_ready((dec32, hT32, cT32))
    assert jnp.allclose(dec32, dec_exp, atol=1e-5, rtol=1e-5)
    assert jnp.allclose(hT32, hT_exp, atol=1e-5, rtol=1e-5)
    assert jnp.allclose(cT32, cT_exp, atol=1e-5, rtol=1e-5)

    print("KERNEL_OK")
</pallas_src>

<mosaic_0001>
module attributes {stable_mosaic.version = 11 : i64} {
  func.func @_matmul_bias_acc_kernel(%arg0: i32, %arg1: i32, %arg2: i32, %arg3: memref<64x128xbf16, #tpu.memory_space<vmem>>, %arg4: memref<128x512xbf16, #tpu.memory_space<vmem>>, %arg5: memref<1x512xf32, #tpu.memory_space<vmem>>, %arg6: memref<64x512xbf16, #tpu.memory_space<vmem>>, %arg7: memref<64x512xf32, #tpu.memory_space<vmem>>) attributes {dimension_semantics = [#tpu.dimension_semantics<parallel>, #tpu.dimension_semantics<parallel>, #tpu.dimension_semantics<arbitrary>], iteration_bounds = array<i64: 1, 1, 1>, scalar_prefetch = 0 : i64, scratch_operands = 1 : i64, tpu.core_type = #tpu.core_type<tc>, window_params = [{transform_indices = @transform_0, window_bounds = array<i64: 64, 128>}, {transform_indices = @transform_1, window_bounds = array<i64: 128, 512>}, {transform_indices = @transform_2, window_bounds = array<i64: 1, 512>}, {transform_indices = @transform_3, window_bounds = array<i64: 64, 512>}]} {
    %c0_i32 = arith.constant 0 : i32
    %0 = arith.cmpi eq, %arg2, %c0_i32 : i32
    %1 = arith.extui %0 : i1 to i32
    %c0_i32_0 = arith.constant 0 : i32
    %2 = arith.cmpi ne, %1, %c0_i32_0 : i32
    scf.if %2 {
      %cst_10 = arith.constant 0.000000e+00 : f32
      %12 = vector.broadcast %cst_10 : f32 to vector<64x512xf32>
      %c0_11 = arith.constant 0 : index
      %c0_12 = arith.constant 0 : index
      %13 = vector.load %arg7[%c0_11, %c0_12] : memref<64x512xf32, #tpu.memory_space<vmem>>, vector<64x512xf32>
      tpu.vector_store %arg7[%c0_11, %c0_12], %12 {strides = array<i32>} : memref<64x512xf32, #tpu.memory_space<vmem>>, vector<64x512xf32>,
    } else {
    }
    %c0 = arith.constant 0 : index
    %c0_1 = arith.constant 0 : index
    %3 = vector.load %arg7[%c0, %c0_1] : memref<64x512xf32, #tpu.memory_space<vmem>>, vector<64x512xf32>
    %c0_2 = arith.constant 0 : index
    %c0_3 = arith.constant 0 : index
    %4 = vector.load %arg3[%c0_2, %c0_3] : memref<64x128xbf16, #tpu.memory_space<vmem>>, vector<64x128xbf16>
    %c0_4 = arith.constant 0 : index
    %c0_5 = arith.constant 0 : index
    %5 = vector.load %arg4[%c0_4, %c0_5] : memref<128x512xbf16, #tpu.memory_space<vmem>>, vector<128x512xbf16>
    %cst = arith.constant dense<0.000000e+00> : vector<64x512xf32>
    %6 = tpu.matmul %4, %5, %cst {dimension_numbers = #tpu.dot_dimension_numbers<[1], [0], [0], [1], [0, 0, 1, 1], [], []>} : vector<64x128xbf16>, vector<128x512xbf16>, vector<64x512xf32> -> vector<64x512xf32>
    %7 = arith.addf %3, %6 : vector<64x512xf32>
    %c0_6 = arith.constant 0 : index
    %c0_7 = arith.constant 0 : index
    %8 = vector.load %arg7[%c0_6, %c0_7] : memref<64x512xf32, #tpu.memory_space<vmem>>, vector<64x512xf32>
    tpu.vector_store %arg7[%c0_6, %c0_7], %7 {strides = array<i32>} : memref<64x512xf32, #tpu.memory_space<vmem>>, vector<64x512xf32>,
    %c0_i32_8 = arith.constant 0 : i32
    %9 = arith.cmpi eq, %arg2, %c0_i32_8 : i32
    %10 = arith.extui %9 : i1 to i32
    %c0_i32_9 = arith.constant 0 : i32
    %11 = arith.cmpi ne, %10, %c0_i32_9 : i32
    scf.if %11 {
      %c0_10 = arith.constant 0 : index
      %c0_11 = arith.constant 0 : index
      %12 = vector.load %arg7[%c0_10, %c0_11] : memref<64x512xf32, #tpu.memory_space<vmem>>, vector<64x512xf32>
      %c0_12 = arith.constant 0 : index
      %c0_13 = arith.constant 0 : index
      %13 = vector.load %arg5[%c0_12, %c0_13] : memref<1x512xf32, #tpu.memory_space<vmem>>, vector<1x512xf32>
      %14 = vector.broadcast %13 : vector<1x512xf32> to vector<64x512xf32>
      %15 = arith.addf %12, %14 : vector<64x512xf32>
      %16 = arith.truncf %15 : vector<64x512xf32> to vector<64x512xbf16>
      %c0_14 = arith.constant 0 : index
      %c0_15 = arith.constant 0 : index
      %17 = vector.load %arg6[%c0_14, %c0_15] : memref<64x512xbf16, #tpu.memory_space<vmem>>, vector<64x512xbf16>
      tpu.vector_store %arg6[%c0_14, %c0_15], %16 {strides = array<i32>} : memref<64x512xbf16, #tpu.memory_space<vmem>>, vector<64x512xbf16>,
    } else {
    }
    return
  }
  func.func @transform_0(%arg0: i32, %arg1: i32, %arg2: i32) -> (i32, i32) {
    %c0_i32 = arith.constant 0 : i32
    return %arg0, %arg2 : i32, i32
  }
  func.func @transform_1(%arg0: i32, %arg1: i32, %arg2: i32) -> (i32, i32) {
    %c0_i32 = arith.constant 0 : i32
    return %arg2, %arg1 : i32, i32
  }
  func.func @transform_2(%arg0: i32, %arg1: i32, %arg2: i32) -> (i32, i32) {
    %c0_i32 = arith.constant 0 : i32
    %c0_i32_0 = arith.constant 0 : i32
    return %c0_i32, %arg1 : i32, i32
  }
  func.func @transform_3(%arg0: i32, %arg1: i32, %arg2: i32) -> (i32, i32) {
    %c0_i32 = arith.constant 0 : i32
    return %arg0, %arg1 : i32, i32
  }
}

</mosaic_0001>

<bundles_post_ra>
// kernel: tpu_custom_call.1
= control target key start
LH: loop header
LB: loop body
LE: loop exit
PB: predicated region body
PF: predicated region fallthrough
CT: control target
= control target key end

     0   :  { %8 = vsyncpa [#allocation4], 0  ;;  %s1086_s0 = inlined_call_operand.hbm [shape: bf16[64,128], index: 0, kind: input, shape index: {}]   ;;  %s1087_s1 = inlined_call_operand.hbm [shape: bf16[128,512], index: 1, kind: input, shape index: {}]   ;;  %s1088_s2 = inlined_call_operand.vmem [shape: f32[1,512], index: 2, kind: input, shape index: {}]   ;;  %s1089_s3 = inlined_call_operand.hbm [shape: bf16[64,512], index: 3, kind: output, shape index: {}]  }
   0x1   :  { %9 = vsyncpa [#allocation7], 0 }
   0x2   :  { %10 = vsyncpa [#allocation5], 0  ;;  %s965_s12 = smov [#allocation3]   ;;  %s893_s16 = scalar_lea.hbm %s1086_s0, 512 }
   0x3   :  { %s16_s13 = sshll.u32 %s965_s12, 4  ;;  %p894_p0 = scmp.ne.s32.totalorder %s1086_s0, %s893_s16  ;;  %s17_s13 = int_to_ptr.vmem [resolvable:$true] %s16_s13 }
   0x4   :  { %p897_p1 = scmp.lt.u32.totalorder %s893_s16, %s1086_s0 }
   0x6   :  { %p899_p2 = pnand %p897_p1, %p894_p0 }
   0x8   :  { %902 = shalt.err (!%p899_p2)
}
   0x9   :  { %s903_s21 = scalar_lea.vmem %s17_s13, 512  ;;  %p908_p4 = scmp.lt.s32.totalorder %s17_s13, %s17_s13 }
   0xa   :  { %p904_p3 = scmp.ne.s32.totalorder %s17_s13, %s903_s21  ;;  %p909_p5 = scmp.lt.s32.totalorder %s903_s21, %s903_s21 }
   0xc   :  { %p910_p6 = por %p909_p5, %p908_p4 }
   0xe   :  { %p911_p7 = pnand %p910_p6, %p904_p3 }
  0x10   :  { %914 = shalt.err (!%p911_p7)
}
  0x11   :  { %s966_s22 = smov 64   ;;  %s967_s23 = smov 4  }
  0x12   :  { %22 = dma.hbm_to_vmem [thread:$0]  %s1086_s0, 512, %s17_s13, [#allocation4], %s966_s22, %s966_s22, %s967_s23  }
  0x13   :  { %s968_s26 = smov [#allocation6]   ;;  %s915_s30 = scalar_lea.hbm %s1087_s1, 4096 }
  0x14   :  { %s28_s27 = sshll.u32 %s968_s26, 4  ;;  %p916_p8 = scmp.ne.s32.totalorder %s1087_s1, %s915_s30  ;;  %s29_s27 = int_to_ptr.vmem [resolvable:$true] %s28_s27 }
  0x15   :  { %p919_p9 = scmp.lt.u32.totalorder %s915_s30, %s1087_s1 }
  0x17   :  { %p921_p10 = pnand %p919_p9, %p916_p8 }
  0x19   :  { %924 = shalt.err (!%p921_p10)
}
  0x1a   :  { %s925_s8 = scalar_lea.vmem %s29_s27, 4096  ;;  %p930_p12 = scmp.lt.s32.totalorder %s29_s27, %s29_s27 }
  0x1b   :  { %p926_p11 = scmp.ne.s32.totalorder %s29_s27, %s925_s8  ;;  %p931_p13 = scmp.lt.s32.totalorder %s925_s8, %s925_s8 }
  0x1d   :  { %p932_p0 = por %p931_p13, %p930_p12 }
  0x1f   :  { %p933_p1 = pnand %p932_p0, %p926_p11 }
  0x21   :  { %936 = shalt.err (!%p933_p1)
}
  0x22   :  { %s969_s0 = smov 256   ;;  %s970_s9 = smov 16  }
  0x23   :  { %34 = dma.hbm_to_vmem [thread:$0]  %s1087_s1, 4096, %s29_s27, [#allocation7], %s969_s0, %s969_s0, %s970_s9  }
  0x24   :  { %959 = dma.done.wait [#allocation4], 512  }
  0x25   :  { %960 = vsyncadd [#allocation4], 4294966784 }
  0x26   :  { %961 = dma.done.wait [#allocation7], 4096  }
  0x27   :  { %962 = vsyncadd [#allocation7], 4294963200  ;;  %v971_v0 = vmov 0   ;;  %v841_v1 = vld [vmem:[#allocation6 + $0x4] ss:$16 sps:$4 sm:$0xff]   ;;  %v890_v34 = vld [vmem:[#allocation3 + $0x8] sm:$0xff]   ;;  %v583_v37 = vlaneseq }
  0x28   :  { %368 = vmatprep.mubr.bf16.mxu0 %v971_v0  ;;  %441 = vmatprep.mubr.bf16.mxu1 %v971_v0  ;;  %v843_v2 = vld [vmem:[#allocation6 + $0xc] ss:$16 sps:$4 sm:$0xff]   ;;  %v845_v3 = vld [vmem:[#allocation6] ss:$16 sps:$4 sm:$0xff]   ;;  %v846_v4 = vld [vmem:[#allocation6 + $0x8] ss:$16 sps:$4 sm:$0xff]  }
  0x29   :  { %336 = vmatprep.subr.bf16.mxu0 %v841_v1  ;;  %409 = vmatprep.subr.bf16.mxu1 %v843_v2  ;;  %v847_v5 = vld [vmem:[#allocation6 + $0x24] ss:$16 sps:$4 sm:$0xff]   ;;  %v849_v6 = vld [vmem:[#allocation6 + $0x2c] ss:$16 sps:$4 sm:$0xff]   ;;  %v851_v7 = vld [vmem:[#allocation6 + $0x20] ss:$16 sps:$4 sm:$0xff]  }
  0x2a   :  { %337 = vmatpush1.bf16.msra.mxu0 %v845_v3  ;;  %410 = vmatpush1.bf16.msra.mxu1 %v846_v4  ;;  %v852_v8 = vld [vmem:[#allocation6 + $0x28] ss:$16 sps:$4 sm:$0xff]   ;;  %v853_v9 = vld [vmem:[#allocation6 + $0x44] ss:$16 sps:$4 sm:$0xff]   ;;  %v855_v10 = vld [vmem:[#allocation6 + $0x4c] ss:$16 sps:$4 sm:$0xff]  }
  0x2b   :  { %338 = vmatprep.subr.bf16.mxu0 %v847_v5  ;;  %411 = vmatprep.subr.bf16.mxu1 %v849_v6  ;;  %v857_v11 = vld [vmem:[#allocation6 + $0x40] ss:$16 sps:$4 sm:$0xff]   ;;  %v858_v12 = vld [vmem:[#allocation6 + $0x48] ss:$16 sps:$4 sm:$0xff]   ;;  %v859_v13 = vld [vmem:[#allocation6 + $0x64] ss:$16 sps:$4 sm:$0xff]  }
  0x2c   :  { %v861_v14 = vld [vmem:[#allocation6 + $0x6c] ss:$16 sps:$4 sm:$0xff]   ;;  %v863_v15 = vld [vmem:[#allocation6 + $0x60] ss:$16 sps:$4 sm:$0xff]   ;;  %v864_v16 = vld [vmem:[#allocation6 + $0x68] ss:$16 sps:$4 sm:$0xff]  }
  0x2d   :  { %v865_v17 = vld [vmem:[#allocation6 + $0x84] ss:$16 sps:$4 sm:$0xff]   ;;  %v867_v18 = vld [vmem:[#allocation6 + $0x8c] ss:$16 sps:$4 sm:$0xff]   ;;  %v869_v19 = vld [vmem:[#allocation6 + $0x80] ss:$16 sps:$4 sm:$0xff]  }
  0x2e   :  { %339 = vmatpush1.bf16.msra.mxu0 %v851_v7  ;;  %412 = vmatpush1.bf16.msra.mxu1 %v852_v8  ;;  %v870_v20 = vld [vmem:[#allocation6 + $0x88] ss:$16 sps:$4 sm:$0xff]   ;;  %v871_v21 = vld [vmem:[#allocation6 + $0xa4] ss:$16 sps:$4 sm:$0xff]   ;;  %v873_v22 = vld [vmem:[#allocation6 + $0xac] ss:$16 sps:$4 sm:$0xff]  }
  0x2f   :  { %340 = vmatprep.subr.bf16.mxu0 %v853_v9  ;;  %413 = vmatprep.subr.bf16.mxu1 %v855_v10  ;;  %v875_v23 = vld [vmem:[#allocation6 + $0xa0] ss:$16 sps:$4 sm:$0xff]   ;;  %v876_v24 = vld [vmem:[#allocation6 + $0xa8] ss:$16 sps:$4 sm:$0xff]   ;;  %v877_v25 = vld [vmem:[#allocation6 + $0xc4] ss:$16 sps:$4 sm:$0xff]  }
  0x30   :  { %v879_v26 = vld [vmem:[#allocation6 + $0xcc] ss:$16 sps:$4 sm:$0xff]   ;;  %v881_v27 = vld [vmem:[#allocation6 + $0xc0] ss:$16 sps:$4 sm:$0xff]   ;;  %v882_v28 = vld [vmem:[#allocation6 + $0xc8] ss:$16 sps:$4 sm:$0xff]  }
  0x31   :  { %v883_v29 = vld [vmem:[#allocation6 + $0xe4] ss:$16 sps:$4 sm:$0xff]   ;;  %v885_v30 = vld [vmem:[#allocation6 + $0xec] ss:$16 sps:$4 sm:$0xff]   ;;  %v887_v31 = vld [vmem:[#allocation6 + $0xe0] ss:$16 sps:$4 sm:$0xff]  }
  0x32   :  { %341 = vmatpush1.bf16.msra.mxu0 %v857_v11  ;;  %414 = vmatpush1.bf16.msra.mxu1 %v858_v12  ;;  %v888_v32 = vld [vmem:[#allocation6 + $0xe8] ss:$16 sps:$4 sm:$0xff]   ;;  %v889_v33 = vld [vmem:[#allocation3] sm:$0xff]   ;;  %v891_v35 = vld [vmem:[#allocation3 + $0x10] sm:$0xff]   ;;  %v584_v38 = vshrl.u32 %v583_v37, 7 }
  0x33   :  { %342 = vmatprep.subr.bf16.mxu0 %v859_v13  ;;  %415 = vmatprep.subr.bf16.mxu1 %v861_v14  ;;  %v892_v36 = vld [vmem:[#allocation3 + $0x18] sm:$0xff]   ;;  %v581_v41 = vld [vmem:[%s1088_s2] sm:$0xf]  ;;  %s972_s2 = smov [#allocation8]  }
  0x34   :  { %v585_v39 = vsub.s32 0, %v584_v38  ;;  %v593_v40 = vsub.s32 2, %v584_v38  ;;  %v589_v42 = vsub.s32 1, %v584_v38  ;;  %v597_v43 = vsub.s32 3, %v584_v38  ;;  %s752_s13 = sshll.u32 %s972_s2, 4  ;;  %s753_s13 = int_to_ptr.vmem [resolvable:$true] %s752_s13 }
  0x35   :  { %s937_s14 = scalar_lea.vmem %s753_s13, 2048  ;;  %p942_p3 = scmp.lt.s32.totalorder %s753_s13, %s753_s13 }
  0x36   :  { %343 = vmatpush1.bf16.msra.mxu0 %v863_v15  ;;  %416 = vmatpush1.bf16.msra.mxu1 %v864_v16  ;;  %v1031_v44 = vrot.slane %v581_v41, %v585_v39  ;;  %v1033_v45 = vrot.slane %v581_v41, %v593_v40  ;;  %v1035_v46 = vrot.slane %v581_v41, %v589_v42  ;;  %p938_p2 = scmp.ne.s32.totalorder %s753_s13, %s937_s14  ;;  %p943_p4 = scmp.lt.s32.totalorder %s937_s14, %s937_s14 }
  0x37   :  { %344 = vmatprep.subr.bf16.mxu0 %v865_v17  ;;  %417 = vmatprep.subr.bf16.mxu1 %v867_v18  ;;  %v1037_v47 = vrot.slane %v581_v41, %v597_v43 }
  0x38   :  { %p944_p5 = por %p943_p4, %p942_p3 }
  0x3a   :  { %345 = vmatpush1.bf16.msra.mxu0 %v869_v19  ;;  %418 = vmatpush1.bf16.msra.mxu1 %v870_v20  ;;  %p945_p6 = pnand %p944_p5, %p938_p2 }
  0x3b   :  { %346 = vmatprep.subr.bf16.mxu0 %v871_v21  ;;  %419 = vmatprep.subr.bf16.mxu1 %v873_v22 }
  0x3e   :  { %347 = vmatpush1.bf16.msra.mxu0 %v875_v23  ;;  %420 = vmatpush1.bf16.msra.mxu1 %v876_v24 }
  0x3f   :  { %348 = vmatprep.subr.bf16.mxu0 %v877_v25  ;;  %421 = vmatprep.subr.bf16.mxu1 %v879_v26 }
  0x42   :  { %349 = vmatpush1.bf16.msra.mxu0 %v881_v27  ;;  %422 = vmatpush1.bf16.msra.mxu1 %v882_v28 }
  0x43   :  { %350 = vmatprep.subr.bf16.mxu0 %v883_v29  ;;  %423 = vmatprep.subr.bf16.mxu1 %v885_v30 }
  0x46   :  { %351 = vmatpush1.bf16.msra.mxu0 %v887_v31  ;;  %424 = vmatpush1.bf16.msra.mxu1 %v888_v32 }
  0x49   :  { %369 = vmatmul.mubr.bf16.vlgmr.msra.gmra.mrb[0].mxu0 %v889_v33  ;;  %442 = vmatmul.mubr.bf16.vlgmr.msra.gmra.mrb[0].mxu1 %v889_v33 }
  0x4a   :  { %378 = vmatprep.mubr.bf16.mxu0 %v971_v0  ;;  %451 = vmatprep.mubr.bf16.mxu1 %v971_v0 }
  0x51   :  { %379 = vmatmul.mubr.bf16.gmra.mrb[4].mxu0 %v890_v34  ;;  %452 = vmatmul.mubr.bf16.gmra.mrb[4].mxu1 %v890_v34 }
  0x52   :  { %388 = vmatprep.mubr.bf16.mxu0 %v971_v0  ;;  %461 = vmatprep.mubr.bf16.mxu1 %v971_v0 }
  0x59   :  { %389 = vmatmul.mubr.bf16.gmra.mrb[8].mxu0 %v891_v35  ;;  %462 = vmatmul.mubr.bf16.gmra.mrb[8].mxu1 %v891_v35 }
  0x5a   :  { %398 = vmatprep.mubr.bf16.mxu0 %v971_v0  ;;  %471 = vmatprep.mubr.bf16.mxu1 %v971_v0 }
  0x61   :  { %399 = vmatmul.mubr.bf16.gmra.mrb[12].mxu0 %v892_v36  ;;  %472 = vmatmul.mubr.bf16.gmra.mrb[12].mxu1 %v892_v36 }
 0x11c   :  { %v370_v48 = vpop.f32.mrb[0].mxu0  ;;  %v443_v49 = vpop.f32.mrb[0].mxu1 }
 0x11d   :  { %v603_v50 = vadd.f32 %v1031_v44, %v370_v48  ;;  %v605_v51 = vadd.f32 %v1033_v45, %v443_v49  ;;  %v372_v52 = vpop.f32.mrb[1].mxu0  ;;  %v445_v53 = vpop.f32.mrb[1].mxu1 }
 0x11e   :  { %v604_v54 = vadd.f32 %v1035_v46, %v372_v52  ;;  %v606_v55 = vadd.f32 %v1037_v47, %v445_v53  ;;  %v374_v56 = vpop.f32.mrb[2].mxu0  ;;  %v447_v57 = vpop.f32.mrb[2].mxu1 }
 0x11f   :  { %v607_v58 = vadd.f32 %v1031_v44, %v374_v56  ;;  %v609_v59 = vadd.f32 %v1033_v45, %v447_v57  ;;  %v376_v60 = vpop.f32.mrb[3].mxu0  ;;  %v449_v61 = vpop.f32.mrb[3].mxu1 }
 0x120   :  { %v817_v62 = vpack.c.bf16 %v604_v54, %v603_v50  ;;  %v818_v63 = vpack.c.bf16 %v606_v55, %v605_v51  ;;  %v608_v0 = vadd.f32 %v1035_v46, %v376_v60  ;;  %v610_v1 = vadd.f32 %v1037_v47, %v449_v61 }
 0x122   :  { %731 = vst [vmem:[#allocation8] sm:$0xff] %v817_v62  ;;  %732 = vst [vmem:[#allocation8 + $0x8] sm:$0xff] %v818_v63  ;;  %v819_v2 = vpack.c.bf16 %v608_v0, %v607_v58  ;;  %v820_v3 = vpack.c.bf16 %v610_v1, %v609_v59 }
 0x124   :  { %733 = vst [vmem:[#allocation8 + $0x10] sm:$0xff] %v819_v2  ;;  %734 = vst [vmem:[#allocation8 + $0x18] sm:$0xff] %v820_v3  ;;  %v380_v4 = vpop.f32.mrb[4].mxu0  ;;  %v453_v5 = vpop.f32.mrb[4].mxu1 }
 0x125   :  { %v611_v6 = vadd.f32 %v1031_v44, %v380_v4  ;;  %v613_v7 = vadd.f32 %v1033_v45, %v453_v5  ;;  %v382_v8 = vpop.f32.mrb[5].mxu0  ;;  %v455_v9 = vpop.f32.mrb[5].mxu1 }
 0x126   :  { %v612_v10 = vadd.f32 %v1035_v46, %v382_v8  ;;  %v614_v11 = vadd.f32 %v1037_v47, %v455_v9  ;;  %v384_v12 = vpop.f32.mrb[6].mxu0  ;;  %v457_v13 = vpop.f32.mrb[6].mxu1 }
 0x127   :  { %v615_v14 = vadd.f32 %v1031_v44, %v384_v12  ;;  %v617_v15 = vadd.f32 %v1033_v45, %v457_v13  ;;  %v386_v16 = vpop.f32.mrb[7].mxu0  ;;  %v459_v17 = vpop.f32.mrb[7].mxu1 }
 0x128   :  { %v821_v18 = vpack.c.bf16 %v612_v10, %v611_v6  ;;  %v822_v19 = vpack.c.bf16 %v614_v11, %v613_v7  ;;  %v616_v20 = vadd.f32 %v1035_v46, %v386_v16  ;;  %v618_v21 = vadd.f32 %v1037_v47, %v459_v17 }
 0x12a   :  { %735 = vst [vmem:[#allocation8 + $0x20] sm:$0xff] %v821_v18  ;;  %736 = vst [vmem:[#allocation8 + $0x28] sm:$0xff] %v822_v19  ;;  %v823_v22 = vpack.c.bf16 %v616_v20, %v615_v14  ;;  %v824_v23 = vpack.c.bf16 %v618_v21, %v617_v15 }
 0x12c   :  { %737 = vst [vmem:[#allocation8 + $0x30] sm:$0xff] %v823_v22  ;;  %738 = vst [vmem:[#allocation8 + $0x38] sm:$0xff] %v824_v23  ;;  %v390_v24 = vpop.f32.mrb[8].mxu0  ;;  %v463_v25 = vpop.f32.mrb[8].mxu1 }
 0x12d   :  { %v619_v26 = vadd.f32 %v1031_v44, %v390_v24  ;;  %v621_v27 = vadd.f32 %v1033_v45, %v463_v25  ;;  %v392_v28 = vpop.f32.mrb[9].mxu0  ;;  %v465_v29 = vpop.f32.mrb[9].mxu1 }
 0x12e   :  { %v620_v30 = vadd.f32 %v1035_v46, %v392_v28  ;;  %v622_v31 = vadd.f32 %v1037_v47, %v465_v29  ;;  %v394_v32 = vpop.f32.mrb[10].mxu0  ;;  %v467_v33 = vpop.f32.mrb[10].mxu1 }
 0x12f   :  { %v623_v34 = vadd.f32 %v1031_v44, %v394_v32  ;;  %v625_v35 = vadd.f32 %v1033_v45, %v467_v33  ;;  %v396_v36 = vpop.f32.mrb[11].mxu0  ;;  %v469_v37 = vpop.f32.mrb[11].mxu1 }
 0x130   :  { %v825_v38 = vpack.c.bf16 %v620_v30, %v619_v26  ;;  %v826_v39 = vpack.c.bf16 %v622_v31, %v621_v27  ;;  %v624_v40 = vadd.f32 %v1035_v46, %v396_v36  ;;  %v626_v41 = vadd.f32 %v1037_v47, %v469_v37 }
 0x132   :  { %739 = vst [vmem:[#allocation8 + $0x40] sm:$0xff] %v825_v38  ;;  %740 = vst [vmem:[#allocation8 + $0x48] sm:$0xff] %v826_v39  ;;  %v827_v42 = vpack.c.bf16 %v624_v40, %v623_v34  ;;  %v828_v43 = vpack.c.bf16 %v626_v41, %v625_v35 }
 0x134   :  { %741 = vst [vmem:[#allocation8 + $0x50] sm:$0xff] %v827_v42  ;;  %742 = vst [vmem:[#allocation8 + $0x58] sm:$0xff] %v828_v43  ;;  %v400_v48 = vpop.f32.mrb[12].mxu0  ;;  %v473_v49 = vpop.f32.mrb[12].mxu1 }
 0x135   :  { %v627_v50 = vadd.f32 %v1031_v44, %v400_v48  ;;  %v629_v51 = vadd.f32 %v1033_v45, %v473_v49  ;;  %v402_v52 = vpop.f32.mrb[13].mxu0  ;;  %v475_v53 = vpop.f32.mrb[13].mxu1 }
 0x136   :  { %v628_v54 = vadd.f32 %v1035_v46, %v402_v52  ;;  %v630_v55 = vadd.f32 %v1037_v47, %v475_v53  ;;  %v404_v56 = vpop.f32.mrb[14].mxu0  ;;  %v477_v57 = vpop.f32.mrb[14].mxu1 }
 0x137   :  { %v631_v58 = vadd.f32 %v1031_v44, %v404_v56  ;;  %v633_v59 = vadd.f32 %v1033_v45, %v477_v57  ;;  %v406_v60 = vpop.f32.mrb[15].mxu0  ;;  %v479_v61 = vpop.f32.mrb[15].mxu1 }
 0x138   :  { %v829_v62 = vpack.c.bf16 %v628_v54, %v627_v50  ;;  %v830_v63 = vpack.c.bf16 %v630_v55, %v629_v51  ;;  %v632_v0 = vadd.f32 %v1035_v46, %v406_v60  ;;  %v634_v1 = vadd.f32 %v1037_v47, %v479_v61 }
 0x13a   :  { %743 = vst [vmem:[#allocation8 + $0x60] sm:$0xff] %v829_v62  ;;  %744 = vst [vmem:[#allocation8 + $0x68] sm:$0xff] %v830_v63  ;;  %v831_v2 = vpack.c.bf16 %v632_v0, %v631_v58  ;;  %v832_v3 = vpack.c.bf16 %v634_v1, %v633_v59 }
 0x13c   :  { %745 = vst [vmem:[#allocation8 + $0x70] sm:$0xff] %v831_v2  ;;  %746 = vst [vmem:[#allocation8 + $0x78] sm:$0xff] %v832_v3 }
 0x13d   :  { %948 = shalt.err (!%p945_p6)
}
 0x13e   :  { %s949_s17 = scalar_lea.hbm %s1089_s3, 2048 }
 0x13f   :  { %p950_p7 = scmp.ne.s32.totalorder %s1089_s3, %s949_s17  ;;  %p953_p8 = scmp.lt.u32.totalorder %s949_s17, %s1089_s3 }
 0x141   :  { %p955_p9 = pnand %p953_p8, %p950_p7 }
 0x143   :  { %958 = shalt.err (!%p955_p9)
}
 0x144   :  { %758 = dma.vmem_to_hbm [thread:$0]  %s753_s13, 2048, %s1089_s3, [#allocation5], %s969_s0, %s969_s0, %s970_s9  }
 0x145   :  { %963 = dma.done.wait [#allocation5], 2048  }
 0x146   :  { %964 = vsyncadd [#allocation5], 4294965248 }
 0x147   :  { %762 = vsyncpa [#allocation4], 1 }
 0x148   :  { %763 = vsyncpa [#allocation7], 1 }
 0x149   :  { %764 = vsyncpa [#allocation5], 1 }

</bundles_post_ra>
